<compile_context>
chip_gen: v7x
topology: tpu7x:2x2x1
jax: 0.10.0
libtpu: 0.0.40
codegen_flags: <defaults>
</compile_context>

<pallas_src>
import math

import numpy as np

import jax
import jax.numpy as jnp
from jax.experimental import pallas as pl
from jax.experimental.pallas import tpu as pltpu

LANE = 128
SUB = 8


def _round_up(v, m):
    return (v + m - 1) // m * m


# ----------------------------- Pallas kernel ----------------------------------
def _cfconv_kernel(off_ref, steps_ref,                      # scalar-prefetch (SMEM)
                   h_ref, nin_ref, nout_ref, dist_ref, mu_ref,
                   w_rbf_ref, b_rbf_ref, ew_ref, w_out_ref, b_out_ref,
                   o_ref,
                   rowid_sc, acc_sc):
    i = pl.program_id(0)                      # node-tile axis ("parallel")
    k = pl.program_id(1)                      # edge-tile reduction axis ("arbitrary")
    n_pad = h_ref.shape[0]
    tn = acc_sc.shape[0]
    te = nin_ref.shape[0]

    # --- per-node-tile init: zero accumulator, hoist scatter row ids -----------
    @pl.when(k == 0)
    def _():
        acc_sc[...] = jnp.zeros_like(acc_sc)
        rowid_sc[...] = (jax.lax.broadcasted_iota(jnp.int32, (tn, 1), 0) + i * tn)

    # --- process this tile's edge block only while it has real edge tiles ------
    @pl.when(k < steps_ref[i])
    def _():
        # gather: message = h[node_in]; one-hot built in-register (never in HBM),
        # exact in bf16 -> MXU matmul.
        sel = (nin_ref[...] ==
               jax.lax.broadcasted_iota(jnp.int32, (te, n_pad), 1)).astype(jnp.bfloat16)
        m = jnp.dot(sel, h_ref[...], preferred_element_type=jnp.float32)     # (TE,Hp)

        # RBF featurization (exp uses the EUP slot), then rbf_layer on the MXU.
        z = dist_ref[...] - mu_ref[...]                                      # (TE,K)
        rbf = jnp.exp(-0.5 * z * z)
        w = jnp.dot(rbf.astype(jnp.bfloat16), w_rbf_ref[...],
                    preferred_element_type=jnp.float32) + b_rbf_ref[...]     # (TE,Hp)

        # continuous filter + explicit f32 per-edge edge_weight scale
        # (padded edges carry edge_weight == 0 -> contribute nothing).
        msg = (m * w) * ew_ref[...]                                          # (TE,Hp)

        # scatter-add into this node tile's f32 accumulator (one-hot MXU matmul;
        # only the compare against node_out is per-step, iota was hoisted).
        scat = (rowid_sc[...] == nout_ref[...]).astype(jnp.bfloat16)         # (TN,TE)
        acc_sc[...] += jnp.dot(scat, msg.astype(jnp.bfloat16),
                               preferred_element_type=jnp.float32)

    # --- finalize: output_layer + shifted_softplus, lane-dense store -----------
    @pl.when(k == pl.num_programs(1) - 1)
    def _():
        out = jnp.dot(acc_sc[...].astype(jnp.bfloat16), w_out_ref[...],
                      preferred_element_type=jnp.float32) + b_out_ref[...]
        sp = jnp.maximum(out, 0.0) + jnp.log1p(jnp.exp(-jnp.abs(out)))
        o_ref[...] = sp - jnp.float32(math.log(2.0))


# ------------------------------- wrapper ---------------------------------------
def continuous_filter_conv(params, edge_list, edge_weight, node_position, x,
                           *, cutoff=5.0, num_gaussian=128,
                           edge_tile=512, node_tile=None):
    x = jnp.asarray(x, jnp.float32)
    N, D_in = x.shape
    E = int(edge_list.shape[0])
    H = params["w_in"].shape[0]
    O = params["w_out"].shape[0]
    K = num_gaussian

    H_pad = _round_up(H, LANE)
    O_pad = _round_up(O, LANE)

    # ---- node tiling ------------------------------------------------------
    N_pad = _round_up(N, SUB)
    if node_tile is not None:
        TN = _round_up(int(node_tile), SUB)
    elif N_pad >= 2 * SUB:
        # Two node tiles by default: the "parallel" axis feeds both v7x
        # TensorCores; harmless on 1-TC chips since edges are partitioned
        # per tile (disjoint work, not duplicated).
        TN = _round_up((N_pad + 1) // 2, SUB)
    else:
        TN = N_pad
    N_pad = _round_up(N_pad, TN)
    n_node_tiles = N_pad // TN

    # ---- host-side CSR edge partitioning by destination node tile ----------
    node_in_np = np.asarray(edge_list[:, 0]).astype(np.int32) if E > 0 else np.zeros((0,), np.int32)
    node_out_np = np.asarray(edge_list[:, 1]).astype(np.int32) if E > 0 else np.zeros((0,), np.int32)
    ew_np = np.asarray(edge_weight).astype(np.float32) if E > 0 else np.zeros((0,), np.float32)

    if E > 0:
        tile_of_edge = node_out_np // TN
        order = np.argsort(tile_of_edge, kind="stable")
        counts = np.bincount(tile_of_edge, minlength=n_node_tiles).astype(np.int64)
    else:
        order = np.zeros((0,), np.int64)
        counts = np.zeros((n_node_tiles,), np.int64)

    # Edge tile: large by default (amortize per-step overhead / fill the MXU),
    # capped by the largest per-tile edge count so small graphs don't over-pad.
    TE = _round_up(int(edge_tile), LANE)
    max_count = max(int(counts.max()) if E > 0 else 1, 1)
    TE = min(TE, _round_up(max_count, LANE))

    steps = np.maximum((counts + TE - 1) // TE, 1).astype(np.int64)     # >= 1 per tile
    seg_len = steps * TE
    seg_start = np.concatenate([[0], np.cumsum(seg_len)])[:-1].astype(np.int64)
    blk_off = np.concatenate([[0], np.cumsum(steps)])[:-1].astype(np.int64)
    E_total = int(seg_len.sum())
    total_steps = int(steps.max())

    nin_pad = np.zeros((E_total,), np.int32)
    nout_pad = np.zeros((E_total,), np.int32)
    ew_pad = np.zeros((E_total,), np.float32)
    if E > 0:
        csum = np.concatenate([[0], np.cumsum(counts)]).astype(np.int64)
        dest = np.empty((E,), np.int64)
        for t in range(n_node_tiles):
            c = int(counts[t])
            dest[csum[t]:csum[t] + c] = seg_start[t] + np.arange(c)
        nin_pad[dest] = node_in_np[order]
        nout_pad[dest] = node_out_np[order]
        ew_pad[dest] = ew_np[order]

    # ---- JAX glue: distances, RBF centers, input_layer, padded weights -----
    pos = jnp.asarray(node_position, jnp.float32)
    nin_j = jnp.asarray(nin_pad)
    nout_j = jnp.asarray(nout_pad)
    diff = pos[nin_j] - pos[nout_j]
    dist = jnp.sqrt(jnp.sum(diff * diff, axis=-1))                      # (E_total,)
    mu = jnp.linspace(0.0, cutoff, K, dtype=jnp.float32)
    spacing = mu[1] - mu[0]

    nin_col = nin_j.reshape(E_total, 1)
    nout_row = nout_j.reshape(1, E_total)
    ew_col = jnp.asarray(ew_pad).reshape(E_total, 1)
    dist_col = (dist / spacing).reshape(E_total, 1)
    mu_row = (mu / spacing).reshape(1, K)

    # input_layer once in f32 XLA, then lane-padded bf16 for the MXU gather.
    h = x @ params["w_in"].T.astype(jnp.float32) + params["b_in"].astype(jnp.float32)
    h_p = jnp.zeros((N_pad, H_pad), jnp.bfloat16).at[:N, :H].set(h.astype(jnp.bfloat16))

    def pad2(a, r, c):
        return jnp.zeros((r, c), a.dtype).at[:a.shape[0], :a.shape[1]].set(a)

    w_rbf_t = pad2(params["w_rbf"].T.astype(jnp.bfloat16), K, H_pad)
    b_rbf = pad2(params["b_rbf"].astype(jnp.float32).reshape(1, H), 1, H_pad)
    w_out_t = pad2(params["w_out"].T.astype(jnp.bfloat16), H_pad, O_pad)
    b_out = pad2(params["b_out"].astype(jnp.float32).reshape(1, O), 1, O_pad)

    blk_off_j = jnp.asarray(blk_off, jnp.int32)
    steps_j = jnp.asarray(steps, jnp.int32)

    # ---- BlockSpecs (index_maps get the scalar-prefetch refs positionally) --
    def _edge_col(i, k, off, stp):
        return (off[i] + jnp.minimum(k, stp[i] - 1), 0)

    def _edge_row(i, k, off, stp):
        return (0, off[i] + jnp.minimum(k, stp[i] - 1))

    def _const(i, k, off, stp):
        return (0, 0)

    in_specs = [
        pl.BlockSpec((N_pad, H_pad), _const),       # h = input_layer(x), resident
        pl.BlockSpec((TE, 1), _edge_col),           # node_in indices
        pl.BlockSpec((1, TE), _edge_row),           # node_out indices
        pl.BlockSpec((TE, 1), _edge_col),           # scaled distances
        pl.BlockSpec((1, K), _const),               # scaled RBF centers
        pl.BlockSpec((K, H_pad), _const),           # w_rbf
        pl.BlockSpec((1, H_pad), _const),           # b_rbf
        pl.BlockSpec((TE, 1), _edge_col),           # edge_weight (0 on padding)
        pl.BlockSpec((H_pad, O_pad), _const),       # w_out
        pl.BlockSpec((1, O_pad), _const),           # b_out
    ]
    out_spec = pl.BlockSpec((TN, O_pad), lambda i, k, off, stp: (i, 0))

    scratch = [
        pltpu.VMEM((TN, 1), jnp.int32),             # hoisted scatter row ids
        pltpu.VMEM((TN, H_pad), jnp.float32),       # f32 scatter-add accumulator
    ]

    # ---- VMEM budget derived from actual block sizes, capped to the chip ----
    block_bytes = [
        N_pad * H_pad * 2,
        TE * 4, TE * 4, TE * 4, K * 4,
        K * H_pad * 2, H_pad * 4,
        TE * 4,
        H_pad * O_pad * 2, O_pad * 4,
        TN * O_pad * 4,                              # output block
    ]
    scratch_bytes = TN * 4 + TN * H_pad * 4
    derived = 2 * sum(block_bytes) + scratch_bytes + (4 << 20)   # 2x: double-buffer
    try:
        cap = int(pltpu.get_tpu_info().vmem_capacity_bytes) * 3 // 4   # 48MiB v7x, 96MiB v5e/v6e
    except Exception:
        cap = 48 * 1024 * 1024
    vmem_limit = int(min(max(derived, 32 * 1024 * 1024), cap))

    inputs = (h_p, nin_col, nout_row, dist_col, mu_row,
              w_rbf_t, b_rbf, ew_col, w_out_t, b_out)

    flops = int(2 * E_total * N_pad * H_pad          # one-hot gather matmul
                + 2 * E_total * K * H_pad            # rbf_layer
                + 2 * E_total * TN * H_pad           # one-hot scatter-add matmul
                + 2 * N_pad * H_pad * O_pad)         # output_layer
    bytes_accessed = int(sum(int(a.size) * a.dtype.itemsize for a in inputs)
                         + N_pad * O_pad * 4 + 2 * n_node_tiles * 4)
    cost = pl.CostEstimate(flops=flops,
                           transcendentals=int(E_total * K),
                           bytes_accessed=bytes_accessed)

    out_pad = pl.pallas_call(
        _cfconv_kernel,
        out_shape=jax.ShapeDtypeStruct((N_pad, O_pad), jnp.float32),
        grid_spec=pltpu.PrefetchScalarGridSpec(
            num_scalar_prefetch=2,
            grid=(n_node_tiles, total_steps),
            in_specs=in_specs,
            out_specs=out_spec,
            scratch_shapes=scratch),
        compiler_params=pltpu.CompilerParams(
            dimension_semantics=("parallel", "arbitrary"),
            vmem_limit_bytes=vmem_limit),
        cost_estimate=cost,
    )(blk_off_j, steps_j, *inputs)

    return out_pad[:N, :O]


# --------------------------- pure-JAX reference (f32) ---------------------------
def reference_forward(params, edge_list, edge_weight, node_position, x,
                      *, cutoff=5.0, num_gaussian=128):
    node_in = edge_list[:, 0]
    node_out = edge_list[:, 1]
    h = x @ params["w_in"].T + params["b_in"]
    m = h[node_in]
    d = jnp.linalg.norm(node_position[node_in] - node_position[node_out],
                        axis=-1, keepdims=True)
    mu = jnp.linspace(0.0, cutoff, num_gaussian)
    s = mu[1] - mu[0]
    rbf = jnp.exp(-0.5 * ((d - mu[None, :]) / s) ** 2)
    w = rbf @ params["w_rbf"].T + params["b_rbf"]
    msg = m * w * edge_weight[:, None]
    upd = jnp.zeros((x.shape[0], h.shape[1]), jnp.float32).at[node_out].add(msg)
    out = upd @ params["w_out"].T + params["b_out"]
    return jax.nn.softplus(out) - jnp.float32(math.log(2.0))


# --------------------------------- main ------------------------------------------
if __name__ == "__main__":
    INPUT_DIM, HIDDEN_DIM, OUTPUT_DIM = 16, 32, 16
    NUM_GAUSSIAN, CUTOFF = 128, 5.0   # constructor default is 100; 128 = lane-friendly
    # TODO(synk): edge_linear (edge_input_dim=None) and batch_norm=False branches are
    # the module defaults and are not implemented/exercised here.

    key = jax.random.PRNGKey(0)
    ks = jax.random.split(key, 10)

    params = {
        "w_in":  0.1 * jax.random.normal(ks[0], (HIDDEN_DIM, INPUT_DIM), jnp.float32),
        "b_in":  0.1 * jax.random.normal(ks[1], (HIDDEN_DIM,), jnp.float32),
        "w_rbf": 0.1 * jax.random.normal(ks[2], (HIDDEN_DIM, NUM_GAUSSIAN), jnp.float32),
        "b_rbf": 0.1 * jax.random.normal(ks[3], (HIDDEN_DIM,), jnp.float32),
        "w_out": 0.1 * jax.random.normal(ks[4], (OUTPUT_DIM, HIDDEN_DIM), jnp.float32),
        "b_out": 0.1 * jax.random.normal(ks[5], (OUTPUT_DIM,), jnp.float32),
    }

    def run_case(case_key, N, E):
        k1, k2, k3, k4, k5 = jax.random.split(case_key, 5)
        x = jax.random.normal(k1, (N, INPUT_DIM), jnp.float32)
        pos = 3.0 * jax.random.normal(k2, (N, 3), jnp.float32)
        n_in = jax.random.randint(k3, (E,), 0, N)
        n_out = jax.random.randint(k4, (E,), 0, N)
        edge_list = jnp.stack([n_in, n_out], axis=1)                     # (E, 2)
        ew = jax.random.uniform(k5, (E,), minval=0.5, maxval=1.5)
        out = continuous_filter_conv(params, edge_list, ew, pos, x,
                                     cutoff=CUTOFF, num_gaussian=NUM_GAUSSIAN)
        out = jax.block_until_ready(out)
        ref = reference_forward(params, edge_list, ew, pos, x,
                                cutoff=CUTOFF, num_gaussian=NUM_GAUSSIAN)
        assert out.shape == (N, OUTPUT_DIM)
        max_err = jnp.max(jnp.abs(out - ref))
        # bf16 MXU inputs (f32 accumulation) vs f32 reference -> loosened tolerance.
        assert jnp.allclose(out, ref, rtol=2e-2, atol=2e-2), \
            f"mismatch (N={N}, E={E}), max abs err {max_err}"

    # Case 1: tiny graph, single node tile (degenerate CSR path).
    run_case(ks[6], N=8, E=16)
    # Case 2: two node tiles ("parallel" axis shardable across v7x TensorCores)
    # with edges pre-partitioned by destination tile via scalar-prefetched offsets.
    run_case(ks[7], N=64, E=256)

    print("KERNEL_OK")
</pallas_src>

<mosaic_0001>
module attributes {stable_mosaic.version = 11 : i64} {
  func.func @_cfconv_kernel(%arg0: i32, %arg1: i32, %arg2: memref<1xi32, #tpu.memory_space<smem>>, %arg3: memref<1xi32, #tpu.memory_space<smem>>, %arg4: memref<8x128xbf16, #tpu.memory_space<vmem>>, %arg5: memref<128x1xi32, #tpu.memory_space<vmem>>, %arg6: memref<1x128xi32, #tpu.memory_space<vmem>>, %arg7: memref<128x1xf32, #tpu.memory_space<vmem>>, %arg8: memref<1x128xf32, #tpu.memory_space<vmem>>, %arg9: memref<128x128xbf16, #tpu.memory_space<vmem>>, %arg10: memref<1x128xf32, #tpu.memory_space<vmem>>, %arg11: memref<128x1xf32, #tpu.memory_space<vmem>>, %arg12: memref<128x128xbf16, #tpu.memory_space<vmem>>, %arg13: memref<1x128xf32, #tpu.memory_space<vmem>>, %arg14: memref<8x128xf32, #tpu.memory_space<vmem>>, %arg15: memref<8x1xi32, #tpu.memory_space<vmem>>, %arg16: memref<8x128xf32, #tpu.memory_space<vmem>>) attributes {dimension_semantics = [#tpu.dimension_semantics<parallel>, #tpu.dimension_semantics<arbitrary>], iteration_bounds = array<i64: 1, 1>, scalar_prefetch = 2 : i64, scratch_operands = 2 : i64, tpu.core_type = #tpu.core_type<tc>, window_params = [{pipeline_mode = #tpu.pipeline_mode<synchronous>, transform_indices = @transform_0, window_bounds = array<i64: 8, 128>}, {transform_indices = @transform_1, window_bounds = array<i64: 128, 1>}, {transform_indices = @transform_2, window_bounds = array<i64: 1, 128>}, {transform_indices = @transform_3, window_bounds = array<i64: 128, 1>}, {pipeline_mode = #tpu.pipeline_mode<synchronous>, transform_indices = @transform_4, window_bounds = array<i64: 1, 128>}, {pipeline_mode = #tpu.pipeline_mode<synchronous>, transform_indices = @transform_5, window_bounds = array<i64: 128, 128>}, {pipeline_mode = #tpu.pipeline_mode<synchronous>, transform_indices = @transform_6, window_bounds = array<i64: 1, 128>}, {transform_indices = @transform_7, window_bounds = array<i64: 128, 1>}, {pipeline_mode = #tpu.pipeline_mode<synchronous>, transform_indices = @transform_8, window_bounds = array<i64: 128, 128>}, {pipeline_mode = #tpu.pipeline_mode<synchronous>, transform_indices = @transform_9, window_bounds = array<i64: 1, 128>}, {transform_indices = @transform_10, window_bounds = array<i64: 8, 128>}]} {
    %c0_i32 = arith.constant 0 : i32
    %0 = arith.cmpi eq, %arg1, %c0_i32 : i32
    %1 = arith.extui %0 : i1 to i32
    %c0_i32_0 = arith.constant 0 : i32
    %2 = arith.cmpi ne, %1, %c0_i32_0 : i32
    scf.if %2 {
      %cst = arith.constant 0.000000e+00 : f32
      %11 = vector.broadcast %cst : f32 to vector<8x128xf32>
      %c0 = arith.constant 0 : index
      %c0_4 = arith.constant 0 : index
      %12 = vector.load %arg16[%c0, %c0_4] : memref<8x128xf32, #tpu.memory_space<vmem>>, vector<8x128xf32>
      tpu.vector_store %arg16[%c0, %c0_4], %11 {strides = array<i32>} : memref<8x128xf32, #tpu.memory_space<vmem>>, vector<8x128xf32>,
      %13 = tpu.iota {dimensions = array<i32: 0>} : vector<8x1xi32>
      %c8_i32 = arith.constant 8 : i32
      %14 = arith.muli %arg0, %c8_i32 : i32
      %15 = vector.broadcast %14 : i32 to vector<8x1xi32>
      %16 = arith.addi %13, %15 : vector<8x1xi32>
      %c0_5 = arith.constant 0 : index
      %c0_6 = arith.constant 0 : index
      %17 = vector.load %arg15[%c0_5, %c0_6] : memref<8x1xi32, #tpu.memory_space<vmem>>, vector<8x1xi32>
      tpu.vector_store %arg15[%c0_5, %c0_6], %16 {strides = array<i32>} : memref<8x1xi32, #tpu.memory_space<vmem>>, vector<8x1xi32>,
    } else {
    }
    %3 = arith.index_cast %arg0 : i32 to index
    %4 = memref.load %arg3[%3] : memref<1xi32, #tpu.memory_space<smem>>
    %5 = arith.cmpi slt, %arg1, %4 : i32
    %6 = arith.extui %5 : i1 to i32
    %c0_i32_1 = arith.constant 0 : i32
    %7 = arith.cmpi ne, %6, %c0_i32_1 : i32
    scf.if %7 {
      %c0 = arith.constant 0 : index
      %c0_4 = arith.constant 0 : index
      %11 = vector.load %arg5[%c0, %c0_4] : memref<128x1xi32, #tpu.memory_space<vmem>>, vector<128x1xi32>
      %12 = tpu.iota {dimensions = array<i32: 1>} : vector<128x8xi32>
      %13 = vector.broadcast %11 : vector<128x1xi32> to vector<128x8xi32>
      %14 = arith.cmpi eq, %13, %12 : vector<128x8xi32>
      %15 = arith.extui %14 : vector<128x8xi1> to vector<128x8xi32>
      %16 = arith.sitofp %15 : vector<128x8xi32> to vector<128x8xf32>
      %17 = arith.truncf %16 : vector<128x8xf32> to vector<128x8xbf16>
      %c0_5 = arith.constant 0 : index
      %c0_6 = arith.constant 0 : index
      %18 = vector.load %arg4[%c0_5, %c0_6] : memref<8x128xbf16, #tpu.memory_space<vmem>>, vector<8x128xbf16>
      %cst = arith.constant dense<0.000000e+00> : vector<128x128xf32>
      %19 = tpu.matmul %17, %18, %cst {dimension_numbers = #tpu.dot_dimension_numbers<[1], [0], [0], [1], [0, 0, 1, 1], [], []>} : vector<128x8xbf16>, vector<8x128xbf16>, vector<128x128xf32> -> vector<128x128xf32>
      %c0_7 = arith.constant 0 : index
      %c0_8 = arith.constant 0 : index
      %20 = vector.load %arg7[%c0_7, %c0_8] : memref<128x1xf32, #tpu.memory_space<vmem>>, vector<128x1xf32>
      %c0_9 = arith.constant 0 : index
      %c0_10 = arith.constant 0 : index
      %21 = vector.load %arg8[%c0_9, %c0_10] : memref<1x128xf32, #tpu.memory_space<vmem>>, vector<1x128xf32>
      %22 = vector.broadcast %20 : vector<128x1xf32> to vector<128x128xf32>
      %23 = vector.broadcast %21 : vector<1x128xf32> to vector<128x128xf32>
      %24 = arith.subf %22, %23 : vector<128x128xf32>
      %cst_11 = arith.constant -5.000000e-01 : f32
      %25 = vector.broadcast %cst_11 : f32 to vector<128x128xf32>
      %26 = arith.mulf %25, %24 : vector<128x128xf32>
      %27 = arith.mulf %26, %24 : vector<128x128xf32>
      %28 = math.exp %27 : vector<128x128xf32>
      %29 = arith.truncf %28 : vector<128x128xf32> to vector<128x128xbf16>
      %c0_12 = arith.constant 0 : index
      %c0_13 = arith.constant 0 : index
      %30 = vector.load %arg9[%c0_12, %c0_13] : memref<128x128xbf16, #tpu.memory_space<vmem>>, vector<128x128xbf16>
      %cst_14 = arith.constant dense<0.000000e+00> : vector<128x128xf32>
      %31 = tpu.matmul %29, %30, %cst_14 {dimension_numbers = #tpu.dot_dimension_numbers<[1], [0], [0], [1], [0, 0, 1, 1], [], []>} : vector<128x128xbf16>, vector<128x128xbf16>, vector<128x128xf32> -> vector<128x128xf32>
      %c0_15 = arith.constant 0 : index
      %c0_16 = arith.constant 0 : index
      %32 = vector.load %arg10[%c0_15, %c0_16] : memref<1x128xf32, #tpu.memory_space<vmem>>, vector<1x128xf32>
      %33 = vector.broadcast %32 : vector<1x128xf32> to vector<128x128xf32>
      %34 = arith.addf %31, %33 : vector<128x128xf32>
      %35 = arith.mulf %19, %34 : vector<128x128xf32>
      %c0_17 = arith.constant 0 : index
      %c0_18 = arith.constant 0 : index
      %36 = vector.load %arg11[%c0_17, %c0_18] : memref<128x1xf32, #tpu.memory_space<vmem>>, vector<128x1xf32>
      %37 = vector.broadcast %36 : vector<128x1xf32> to vector<128x128xf32>
      %38 = arith.mulf %35, %37 : vector<128x128xf32>
      %c0_19 = arith.constant 0 : index
      %c0_20 = arith.constant 0 : index
      %39 = vector.load %arg15[%c0_19, %c0_20] : memref<8x1xi32, #tpu.memory_space<vmem>>, vector<8x1xi32>
      %c0_21 = arith.constant 0 : index
      %c0_22 = arith.constant 0 : index
      %40 = vector.load %arg6[%c0_21, %c0_22] : memref<1x128xi32, #tpu.memory_space<vmem>>, vector<1x128xi32>
      %41 = vector.broadcast %39 : vector<8x1xi32> to vector<8x128xi32>
      %42 = vector.broadcast %40 : vector<1x128xi32> to vector<8x128xi32>
      %43 = arith.cmpi eq, %41, %42 : vector<8x128xi32>
      %44 = arith.extui %43 : vector<8x128xi1> to vector<8x128xi32>
      %45 = arith.sitofp %44 : vector<8x128xi32> to vector<8x128xf32>
      %46 = arith.truncf %45 : vector<8x128xf32> to vector<8x128xbf16>
      %c0_23 = arith.constant 0 : index
      %c0_24 = arith.constant 0 : index
      %47 = vector.load %arg16[%c0_23, %c0_24] : memref<8x128xf32, #tpu.memory_space<vmem>>, vector<8x128xf32>
      %48 = arith.truncf %38 : vector<128x128xf32> to vector<128x128xbf16>
      %cst_25 = arith.constant dense<0.000000e+00> : vector<8x128xf32>
      %49 = tpu.matmul %46, %48, %cst_25 {dimension_numbers = #tpu.dot_dimension_numbers<[1], [0], [0], [1], [0, 0, 1, 1], [], []>} : vector<8x128xbf16>, vector<128x128xbf16>, vector<8x128xf32> -> vector<8x128xf32>
      %50 = arith.addf %47, %49 : vector<8x128xf32>
      %c0_26 = arith.constant 0 : index
      %c0_27 = arith.constant 0 : index
      %51 = vector.load %arg16[%c0_26, %c0_27] : memref<8x128xf32, #tpu.memory_space<vmem>>, vector<8x128xf32>
      tpu.vector_store %arg16[%c0_26, %c0_27], %50 {strides = array<i32>} : memref<8x128xf32, #tpu.memory_space<vmem>>, vector<8x128xf32>,
    } else {
    }
    %c0_i32_2 = arith.constant 0 : i32
    %8 = arith.cmpi eq, %arg1, %c0_i32_2 : i32
    %9 = arith.extui %8 : i1 to i32
    %c0_i32_3 = arith.constant 0 : i32
    %10 = arith.cmpi ne, %9, %c0_i32_3 : i32
    scf.if %10 {
      %c0 = arith.constant 0 : index
      %c0_4 = arith.constant 0 : index
      %11 = vector.load %arg16[%c0, %c0_4] : memref<8x128xf32, #tpu.memory_space<vmem>>, vector<8x128xf32>
      %12 = arith.truncf %11 : vector<8x128xf32> to vector<8x128xbf16>
      %c0_5 = arith.constant 0 : index
      %c0_6 = arith.constant 0 : index
      %13 = vector.load %arg12[%c0_5, %c0_6] : memref<128x128xbf16, #tpu.memory_space<vmem>>, vector<128x128xbf16>
      %cst = arith.constant dense<0.000000e+00> : vector<8x128xf32>
      %14 = tpu.matmul %12, %13, %cst {dimension_numbers = #tpu.dot_dimension_numbers<[1], [0], [0], [1], [0, 0, 1, 1], [], []>} : vector<8x128xbf16>, vector<128x128xbf16>, vector<8x128xf32> -> vector<8x128xf32>
      %c0_7 = arith.constant 0 : index
      %c0_8 = arith.constant 0 : index
      %15 = vector.load %arg13[%c0_7, %c0_8] : memref<1x128xf32, #tpu.memory_space<vmem>>, vector<1x128xf32>
      %16 = vector.broadcast %15 : vector<1x128xf32> to vector<8x128xf32>
      %17 = arith.addf %14, %16 : vector<8x128xf32>
      %cst_9 = arith.constant 0.000000e+00 : f32
      %18 = vector.broadcast %cst_9 : f32 to vector<8x128xf32>
      %19 = arith.maximumf %17, %18 : vector<8x128xf32>
      %20 = math.absf %17 : vector<8x128xf32>
      %cst_10 = arith.constant 0.000000e+00 : f32
      %21 = vector.broadcast %cst_10 : f32 to vector<8x128xf32>
      %22 = arith.subf %21, %20 : vector<8x128xf32>
      %23 = math.exp %22 : vector<8x128xf32>
      %24 = math.log1p %23 : vector<8x128xf32>
      %25 = arith.addf %19, %24 : vector<8x128xf32>
      %cst_11 = arith.constant 0.693147182 : f32
      %26 = vector.broadcast %cst_11 : f32 to vector<8x128xf32>
      %27 = arith.subf %25, %26 : vector<8x128xf32>
      %c0_12 = arith.constant 0 : index
      %c0_13 = arith.constant 0 : index
      %28 = vector.load %arg14[%c0_12, %c0_13] : memref<8x128xf32, #tpu.memory_space<vmem>>, vector<8x128xf32>
      tpu.vector_store %arg14[%c0_12, %c0_13], %27 {strides = array<i32>} : memref<8x128xf32, #tpu.memory_space<vmem>>, vector<8x128xf32>,
    } else {
    }
    return
  }
  func.func @transform_0(%arg0: i32, %arg1: i32, %arg2: memref<1xi32, #tpu.memory_space<smem>>, %arg3: memref<1xi32, #tpu.memory_space<smem>>) -> (i32, i32) {
    %c0_i32 = arith.constant 0 : i32
    %c0_i32_0 = arith.constant 0 : i32
    %c0_i32_1 = arith.constant 0 : i32
    return %c0_i32, %c0_i32_0 : i32, i32
  }
  func.func @transform_1(%arg0: i32, %arg1: i32, %arg2: memref<1xi32, #tpu.memory_space<smem>>, %arg3: memref<1xi32, #tpu.memory_space<smem>>) -> (i32, i32) {
    %0 = arith.index_cast %arg0 : i32 to index
    %1 = memref.load %arg2[%0] : memref<1xi32, #tpu.memory_space<smem>>
    %2 = arith.index_cast %arg0 : i32 to index
    %3 = memref.load %arg3[%2] : memref<1xi32, #tpu.memory_space<smem>>
    %c1_i32 = arith.constant 1 : i32
    %4 = arith.subi %3, %c1_i32 : i32
    %5 = arith.minsi %arg1, %4 : i32
    %6 = arith.addi %1, %5 : i32
    %c0_i32 = arith.constant 0 : i32
    %c0_i32_0 = arith.constant 0 : i32
    return %6, %c0_i32 : i32, i32
  }
  func.func @transform_2(%arg0: i32, %arg1: i32, %arg2: memref<1xi32, #tpu.memory_space<smem>>, %arg3: memref<1xi32, #tpu.memory_space<smem>>) -> (i32, i32) {
    %0 = arith.index_cast %arg0 : i32 to index
    %1 = memref.load %arg2[%0] : memref<1xi32, #tpu.memory_space<smem>>
    %2 = arith.index_cast %arg0 : i32 to index
    %3 = memref.load %arg3[%2] : memref<1xi32, #tpu.memory_space<smem>>
    %c1_i32 = arith.constant 1 : i32
    %4 = arith.subi %3, %c1_i32 : i32
    %5 = arith.minsi %arg1, %4 : i32
    %6 = arith.addi %1, %5 : i32
    %c0_i32 = arith.constant 0 : i32
    %c0_i32_0 = arith.constant 0 : i32
    return %c0_i32, %6 : i32, i32
  }
  func.func @transform_3(%arg0: i32, %arg1: i32, %arg2: memref<1xi32, #tpu.memory_space<smem>>, %arg3: memref<1xi32, #tpu.memory_space<smem>>) -> (i32, i32) {
    %0 = arith.index_cast %arg0 : i32 to index
    %1 = memref.load %arg2[%0] : memref<1xi32, #tpu.memory_space<smem>>
    %2 = arith.index_cast %arg0 : i32 to index
    %3 = memref.load %arg3[%2] : memref<1xi32, #tpu.memory_space<smem>>
    %c1_i32 = arith.constant 1 : i32
    %4 = arith.subi %3, %c1_i32 : i32
    %5 = arith.minsi %arg1, %4 : i32
    %6 = arith.addi %1, %5 : i32
    %c0_i32 = arith.constant 0 : i32
    %c0_i32_0 = arith.constant 0 : i32
    return %6, %c0_i32 : i32, i32
  }
  func.func @transform_4(%arg0: i32, %arg1: i32, %arg2: memref<1xi32, #tpu.memory_space<smem>>, %arg3: memref<1xi32, #tpu.memory_space<smem>>) -> (i32, i32) {
    %c0_i32 = arith.constant 0 : i32
    %c0_i32_0 = arith.constant 0 : i32
    %c0_i32_1 = arith.constant 0 : i32
    return %c0_i32, %c0_i32_0 : i32, i32
  }
  func.func @transform_5(%arg0: i32, %arg1: i32, %arg2: memref<1xi32, #tpu.memory_space<smem>>, %arg3: memref<1xi32, #tpu.memory_space<smem>>) -> (i32, i32) {
    %c0_i32 = arith.constant 0 : i32
    %c0_i32_0 = arith.constant 0 : i32
    %c0_i32_1 = arith.constant 0 : i32
    return %c0_i32, %c0_i32_0 : i32, i32
  }
  func.func @transform_6(%arg0: i32, %arg1: i32, %arg2: memref<1xi32, #tpu.memory_space<smem>>, %arg3: memref<1xi32, #tpu.memory_space<smem>>) -> (i32, i32) {
    %c0_i32 = arith.constant 0 : i32
    %c0_i32_0 = arith.constant 0 : i32
    %c0_i32_1 = arith.constant 0 : i32
    return %c0_i32, %c0_i32_0 : i32, i32
  }
  func.func @transform_7(%arg0: i32, %arg1: i32, %arg2: memref<1xi32, #tpu.memory_space<smem>>, %arg3: memref<1xi32, #tpu.memory_space<smem>>) -> (i32, i32) {
    %0 = arith.index_cast %arg0 : i32 to index
    %1 = memref.load %arg2[%0] : memref<1xi32, #tpu.memory_space<smem>>
    %2 = arith.index_cast %arg0 : i32 to index
    %3 = memref.load %arg3[%2] : memref<1xi32, #tpu.memory_space<smem>>
    %c1_i32 = arith.constant 1 : i32
    %4 = arith.subi %3, %c1_i32 : i32
    %5 = arith.minsi %arg1, %4 : i32
    %6 = arith.addi %1, %5 : i32
    %c0_i32 = arith.constant 0 : i32
    %c0_i32_0 = arith.constant 0 : i32
    return %6, %c0_i32 : i32, i32
  }
  func.func @transform_8(%arg0: i32, %arg1: i32, %arg2: memref<1xi32, #tpu.memory_space<smem>>, %arg3: memref<1xi32, #tpu.memory_space<smem>>) -> (i32, i32) {
    %c0_i32 = arith.constant 0 : i32
    %c0_i32_0 = arith.constant 0 : i32
    %c0_i32_1 = arith.constant 0 : i32
    return %c0_i32, %c0_i32_0 : i32, i32
  }
  func.func @transform_9(%arg0: i32, %arg1: i32, %arg2: memref<1xi32, #tpu.memory_space<smem>>, %arg3: memref<1xi32, #tpu.memory_space<smem>>) -> (i32, i32) {
    %c0_i32 = arith.constant 0 : i32
    %c0_i32_0 = arith.constant 0 : i32
    %c0_i32_1 = arith.constant 0 : i32
    return %c0_i32, %c0_i32_0 : i32, i32
  }
  func.func @transform_10(%arg0: i32, %arg1: i32, %arg2: memref<1xi32, #tpu.memory_space<smem>>, %arg3: memref<1xi32, #tpu.memory_space<smem>>) -> (i32, i32) {
    %c0_i32 = arith.constant 0 : i32
    %c0_i32_0 = arith.constant 0 : i32
    return %arg0, %c0_i32 : i32, i32
  }
}

</mosaic_0001>

<bundles_post_ra>
// kernel: tpu_custom_call.1
= control target key start
LH: loop header
LB: loop body
LE: loop exit
PB: predicated region body
PF: predicated region fallthrough
CT: control target
= control target key end

     0   :  { %19 = vsyncpa [#allocation8], 0  ;;  %v226_v0 = vlaneseq  ;;  %v1489_v1 = vmov 0.0   ;;  %vm231_vm0 = vcmask 7168   ;;  %s1815_s0 = inlined_call_operand.<no memory space> [shape: s32[1], index: 0, kind: input, shape index: {}]   ;;  %s1816_s1 = inlined_call_operand.<no memory space> [shape: s32[1], index: 1, kind: input, shape index: {}]   ;;  %s1817_s2 = inlined_call_operand.vmem [shape: bf16[8,128], index: 2, kind: input, shape index: {}]   ;;  %s1818_s3 = inlined_call_operand.vmem [shape: s32[128,1], index: 3, kind: input, shape index: {}]   ;;  %s1819_s4 = inlined_call_operand.vmem [shape: s32[1,128], index: 4, kind: input, shape index: {}]   ;;  %s1820_s5 = inlined_call_operand.vmem [shape: f32[128,1], index: 5, kind: input, shape index: {}]   ;;  %s1821_s6 = inlined_call_operand.vmem [shape: f32[1,128], index: 6, kind: input, shape index: {}]   ;;  %s1822_s7 = inlined_call_operand.vmem [shape: bf16[128,128], index: 7, kind: input, shape index: {}]   ;;  %s1823_s8 = inlined_call_operand.vmem [shape: f32[1,128], index: 8, kind: input, shape index: {}]   ;;  %s1824_s9 = inlined_call_operand.vmem [shape: f32[128,1], index: 9, kind: input, shape index: {}]   ;;  %s1825_s10 = inlined_call_operand.vmem [shape: bf16[128,128], index: 10, kind: input, shape index: {}]   ;;  %s1826_s11 = inlined_call_operand.vmem [shape: f32[1,128], index: 11, kind: input, shape index: {}]   ;;  %s1827_s12 = inlined_call_operand.hbm [shape: f32[8,128], index: 12, kind: output, shape index: {}]  }
   0x1   :  { %s1206_s23 = sadd.s32 4294967295, %s1816_s1  ;;  %225 = vst [vmem:[#allocation3] sm:$0xff] %v1489_v1  ;;  %p1221_p3 = scmp.le.s32.totalorder %s1816_s1, 0 }
   0x2   :  { %p1207_p0 = scmp.gt.s32.totalorder %s1206_s23, 0  ;;  %v227_v2 = vshrl.u32 %v226_v0, 7  ;;  %v1490_v5 = vmov (!%p1221_p3), 0   ;;  %v1413_v14 = vld [vmem:[%s1822_s7] sm:$0xff] (!%p1221_p3)   ;;  %v1414_v16 = vld [vmem:[%s1822_s7 + $0x8] sm:$0xff] (!%p1221_p3)   ;;  %v1415_v18 = vld [vmem:[%s1822_s7 + $0x10] sm:$0xff] (!%p1221_p3)  }
   0x3   :  { %1412 = vset.pattern.permute.xlu1 (!%p1221_p3), %v1490_v5  ;;  %1411 = vset.pattern.permute.xlu0 (!%p1221_p3), %v1490_v5  ;;  %v1416_v21 = vld [vmem:[%s1822_s7 + $0x18] sm:$0xff] (!%p1221_p3)   ;;  %v1417_v24 = vld [vmem:[%s1822_s7 + $0x20] sm:$0xff] (!%p1221_p3)   ;;  %vm386_vm1 = vcmask (!%p1221_p3), 1043456   ;;  %v1418_v29 = vld [vmem:[%s1822_s7 + $0x28] sm:$0xff] (!%p1221_p3)   ;;  %v1491_v32 = vmov (!%p1221_p3), 0.0   ;;  %vm361_vm4 = vcmask (!%p1221_p3), 64512  }
   0x4   :  { %s1829_s23 = smov (%p1207_p0, %s1206_s23), 0  ;;  %232 = vst.msk [vmem:[#allocation2] sm:$0xff] %vm231_vm0, %v227_v2  ;;  %1331 = vmatprep.subr.bf16.mxu1 (!%p1221_p3), %v1413_v14  ;;  %v360_v27 = vld [vmem:[%s1817_s2] sm:$0xf] (!%p1221_p3)  ;;  %v1419_v33 = vld [vmem:[%s1822_s7 + $0x30] sm:$0xff] (!%p1221_p3)   ;;  %v1420_v36 = vld [vmem:[%s1822_s7 + $0x38] sm:$0xff] (!%p1221_p3)  }
   0x5   :  { %s156_s26 = sadd.s32 %s1829_s23, %s1815_s0  ;;  %1332 = vmatpush3.bf16.msra.mxu1 (!%p1221_p3), %v1413_v14  ;;  %1403 = vmatprep.subr.msk.bf16.mxu0 (!%p1221_p3), %vm386_vm1, %v360_v27  ;;  %v388_v28 = vsel (!%p1221_p3), %vm386_vm1, %v360_v27, 0  ;;  %v1672_v2 = vld [vmem:[%s1821_s6] ss:$0 sm:$0xff] (!%p1221_p3) }
   0x6   :  { %s1208_s27 = sshll.u32 %s156_s26, 4  ;;  %p175_p1 = scmp.lt.s32.totalorder %s156_s26, 0  ;;  %1333 = vmatprep.subr.bf16.mxu1 (!%p1221_p3), %v1414_v16  ;;  %1314 = vmatpush3.bf16.msra.mxu0 (!%p1221_p3), %v388_v28 }
   0x7   :  { %p158_p2 = scmp.lt.s32.totalorder %s1208_s27, 15  ;;  %237 = sbr.rel (%p1221_p3) target bundleno = 649 (0x289), region = 49  ;;  %1363 = vmatprep.subr.bf16.mxu0 (!%p1221_p3), %v1491_v32 }
   0x8   :  { %s1831_s26 = smov (!%p175_p1, %s156_s26), 0 }
   0x9   :  { %s1833_s27 = smov (!%p158_p2, %s1208_s27), 15  ;;  %s177_s30 = scalar_lea.vmem %s1819_s4, %s1831_s26  ;;  %1334 = vmatpush3.bf16.msra.mxu1 (!%p1221_p3), %v1414_v16 }
   0xa   :  { %s1209_s13 = sshll.u32 %s1833_s27, 3  ;;  %1335 = vmatprep.subr.bf16.mxu1 (!%p1221_p3), %v1415_v18 }
   0xb   :  { %s1578_s16 = scalar_lea.vmem %s1818_s3, %s1209_s13  ;;  %s1583_s0 = scalar_lea.vmem %s1820_s5, %s1209_s13  ;;  %v974_v63 = vld [vmem:[#allocation2] sm:$0xff] (!%p1221_p3) }
   0xc   :  { %s1588_s21 = scalar_lea.vmem %s1824_s9, %s1209_s13  ;;  %v489_v3 = vld [vmem:[%s1583_s0 + $0x10] sm:$0xff] (!%p1221_p3)  ;;  %v487_v4 = vld [vmem:[%s1583_s0] sm:$0xff] (!%p1221_p3)  ;;  %v490_v6 = vld [vmem:[%s1583_s0 + $0x18] sm:$0xff] (!%p1221_p3) }
   0xd   :  { %516 = vperm.xlu1 (!%p1221_p3), %1412, %v489_v3   ;;  %506 = vperm.xlu0 (!%p1221_p3), %1411, %v487_v4   ;;  %v488_v7 = vld [vmem:[%s1583_s0 + $0x8] sm:$0xff] (!%p1221_p3)  ;;  %v491_v9 = vld [vmem:[%s1583_s0 + $0x20] sm:$0xff] (!%p1221_p3)  ;;  %v494_v10 = vld [vmem:[%s1583_s0 + $0x38] sm:$0xff] (!%p1221_p3) }
   0xe   :  { %v492_v8 = vld [vmem:[%s1583_s0 + $0x28] sm:$0xff]  ;;  %v493_v11 = vld [vmem:[%s1583_s0 + $0x30] sm:$0xff]  ;;  %v495_v13 = vld [vmem:[%s1583_s0 + $0x40] sm:$0xff]  ;;  %1336 = vmatpush3.bf16.msra.mxu1 %v1415_v18 }
   0xf   :  { %v496_v12 = vld [vmem:[%s1583_s0 + $0x48] sm:$0xff]  ;;  %v498_v15 = vld [vmem:[%s1583_s0 + $0x58] sm:$0xff]  ;;  %v497_v17 = vld [vmem:[%s1583_s0 + $0x50] sm:$0xff]  ;;  %1337 = vmatprep.subr.bf16.mxu1 %v1416_v21 }
  0x10   :  { %v239_v19 = vld [vmem:[%s1578_s16 + $0x8] sm:$0xff]  ;;  %v238_v20 = vld [vmem:[%s1578_s16] sm:$0xff]  ;;  %v241_v22 = vld [vmem:[%s1578_s16 + $0x18] sm:$0xff] }
  0x11   :  { %521 = vperm.xlu1 %1412, %v490_v6   ;;  %511 = vperm.xlu0 %1411, %v488_v7   ;;  %v240_v23 = vld [vmem:[%s1578_s16 + $0x10] sm:$0xff]  ;;  %v500_v25 = vld [vmem:[%s1583_s0 + $0x68] sm:$0xff]  ;;  %v499_v26 = vld [vmem:[%s1583_s0 + $0x60] sm:$0xff] }
  0x12   :  { %1338 = vmatpush3.bf16.msra.mxu1 %v1416_v21  ;;  %v502_v30 = vld [vmem:[%s1583_s0 + $0x78] sm:$0xff]  ;;  %v501_v31 = vld [vmem:[%s1583_s0 + $0x70] sm:$0xff]  ;;  %v243_v34 = vld [vmem:[%s1578_s16 + $0x28] sm:$0xff] }
  0x13   :  { %1339 = vmatprep.subr.bf16.mxu1 %v1417_v24  ;;  %v242_v35 = vld [vmem:[%s1578_s16 + $0x20] sm:$0xff]  ;;  %v245_v37 = vld [vmem:[%s1578_s16 + $0x38] sm:$0xff]  ;;  %v244_v38 = vld [vmem:[%s1578_s16 + $0x30] sm:$0xff] }
  0x14   :  { %v247_v39 = vld [vmem:[%s1578_s16 + $0x48] sm:$0xff]  ;;  %v246_v40 = vld [vmem:[%s1578_s16 + $0x40] sm:$0xff]  ;;  %v249_v41 = vld [vmem:[%s1578_s16 + $0x58] sm:$0xff] }
  0x15   :  { %531 = vperm.xlu1 %1412, %v492_v8   ;;  %526 = vperm.xlu0 %1411, %v491_v9   ;;  %v248_v42 = vld [vmem:[%s1578_s16 + $0x50] sm:$0xff]  ;;  %v251_v43 = vld [vmem:[%s1578_s16 + $0x68] sm:$0xff]  ;;  %v250_v44 = vld [vmem:[%s1578_s16 + $0x60] sm:$0xff] }
  0x16   :  { %1340 = vmatpush3.bf16.msra.mxu1 %v1417_v24  ;;  %v253_v45 = vld [vmem:[%s1578_s16 + $0x78] sm:$0xff]  ;;  %v252_v46 = vld [vmem:[%s1578_s16 + $0x70] sm:$0xff]  ;;  %v863_v47 = vld [vmem:[%s1588_s21 + $0x8] sm:$0xff] }
  0x17   :  { %1341 = vmatprep.subr.bf16.mxu1 %v1418_v29  ;;  %v862_v48 = vld [vmem:[%s1588_s21] sm:$0xff]  ;;  %v865_v49 = vld [vmem:[%s1588_s21 + $0x18] sm:$0xff]  ;;  %v864_v50 = vld [vmem:[%s1588_s21 + $0x10] sm:$0xff] }
  0x18   :  { %v867_v51 = vld [vmem:[%s1588_s21 + $0x28] sm:$0xff]  ;;  %v866_v52 = vld [vmem:[%s1588_s21 + $0x20] sm:$0xff]  ;;  %v869_v53 = vld [vmem:[%s1588_s21 + $0x38] sm:$0xff] }
  0x19   :  { %541 = vperm.xlu1 %1412, %v494_v10   ;;  %536 = vperm.xlu0 %1411, %v493_v11   ;;  %v868_v54 = vld [vmem:[%s1588_s21 + $0x30] sm:$0xff]  ;;  %v871_v55 = vld [vmem:[%s1588_s21 + $0x48] sm:$0xff]  ;;  %v870_v56 = vld [vmem:[%s1588_s21 + $0x40] sm:$0xff] }
  0x1a   :  { %1342 = vmatpush3.bf16.msra.mxu1 %v1418_v29  ;;  %v873_v57 = vld [vmem:[%s1588_s21 + $0x58] sm:$0xff]  ;;  %v872_v58 = vld [vmem:[%s1588_s21 + $0x50] sm:$0xff]  ;;  %v875_v59 = vld [vmem:[%s1588_s21 + $0x68] sm:$0xff] }
  0x1b   :  { %1343 = vmatprep.subr.bf16.mxu1 %v1419_v33  ;;  %v874_v60 = vld [vmem:[%s1588_s21 + $0x60] sm:$0xff]  ;;  %v877_v61 = vld [vmem:[%s1588_s21 + $0x78] sm:$0xff]  ;;  %v876_v62 = vld [vmem:[%s1588_s21 + $0x70] sm:$0xff] }
  0x1d   :  { %551 = vperm.xlu1 %1412, %v496_v12   ;;  %546 = vperm.xlu0 %1411, %v495_v13  }
  0x1e   :  { %1344 = vmatpush3.bf16.msra.mxu1 %v1419_v33 }
  0x1f   :  { %1345 = vmatprep.subr.bf16.mxu1 %v1420_v36 }
  0x21   :  { %561 = vperm.xlu1 %1412, %v498_v15   ;;  %556 = vperm.xlu0 %1411, %v497_v17  }
  0x22   :  { %1346 = vmatpush3.bf16.msra.mxu1 %v1420_v36 }
  0x25   :  { %260 = vperm.xlu1 %1412, %v239_v19   ;;  %257 = vperm.xlu0 %1411, %v238_v20  }
  0x29   :  { %266 = vperm.xlu1 %1412, %v241_v22   ;;  %263 = vperm.xlu0 %1411, %v240_v23  }
  0x2d   :  { %571 = vperm.xlu1 %1412, %v500_v25   ;;  %566 = vperm.xlu0 %1411, %v499_v26  }
  0x31   :  { %581 = vperm.xlu1 %1412, %v502_v30   ;;  %576 = vperm.xlu0 %1411, %v501_v31  }
  0x35   :  { %272 = vperm.xlu1 %1412, %v243_v34   ;;  %269 = vperm.xlu0 %1411, %v242_v35  }
  0x39   :  { %278 = vperm.xlu1 %1412, %v245_v37   ;;  %275 = vperm.xlu0 %1411, %v244_v38  }
  0x3d   :  { %284 = vperm.xlu1 %1412, %v247_v39   ;;  %281 = vperm.xlu0 %1411, %v246_v40  }
  0x41   :  { %290 = vperm.xlu1 %1412, %v249_v41   ;;  %287 = vperm.xlu0 %1411, %v248_v42  }
  0x45   :  { %296 = vperm.xlu1 %1412, %v251_v43   ;;  %293 = vperm.xlu0 %1411, %v250_v44  }
  0x49   :  { %302 = vperm.xlu1 %1412, %v253_v45   ;;  %299 = vperm.xlu0 %1411, %v252_v46  }
  0x4d   :  { %885 = vperm.xlu1 %1412, %v863_v47   ;;  %880 = vperm.xlu0 %1411, %v862_v48  }
  0x51   :  { %895 = vperm.xlu1 %1412, %v865_v49   ;;  %890 = vperm.xlu0 %1411, %v864_v50  }
  0x55   :  { %905 = vperm.xlu1 %1412, %v867_v51   ;;  %900 = vperm.xlu0 %1411, %v866_v52   ;;  %v1685_v52 = vand.u32 127, %v226_v0 }
  0x59   :  { %915 = vperm.xlu1 %1412, %v869_v53   ;;  %910 = vperm.xlu0 %1411, %v868_v54  }
  0x5d   :  { %925 = vperm.xlu1 %1412, %v871_v55   ;;  %920 = vperm.xlu0 %1411, %v870_v56  }
  0x61   :  { %935 = vperm.xlu1 %1412, %v873_v57   ;;  %930 = vperm.xlu0 %1411, %v872_v58  }
  0x65   :  { %945 = vperm.xlu1 %1412, %v875_v59   ;;  %940 = vperm.xlu0 %1411, %v874_v60  }
  0x69   :  { %955 = vperm.xlu1 %1412, %v877_v61   ;;  %950 = vperm.xlu0 %1411, %v876_v62  }
  0x6d   :  { %977 = vperm.xlu0 %1411, %v974_v63  }
  0x8c   :  { %v517_v3 = vpop.permute.xlu1 %516  ;;  %v507_v4 = vpop.permute.xlu0 %506 }
  0x8d   :  { %v592_v5 = vsub.f32 %v517_v3, %v1672_v2  ;;  %v590_v6 = vsub.f32 %v507_v4, %v1672_v2 }
  0x8f   :  { %v608_v7 = vmul.f32 -0.5, %v592_v5  ;;  %v606_v8 = vmul.f32 -0.5, %v590_v6 }
  0x90   :  { %v522_v9 = vpop.permute.xlu1 %521  ;;  %v512_v10 = vpop.permute.xlu0 %511 }
  0x91   :  { %v624_v11 = vmul.f32 %v608_v7, %v592_v5  ;;  %v593_v12 = vsub.f32 %v522_v9, %v1672_v2  ;;  %v591_v13 = vsub.f32 %v512_v10, %v1672_v2  ;;  %v622_v14 = vmul.f32 %v606_v8, %v590_v6 }
  0x93   :  { %v609_v15 = vmul.f32 -0.5, %v593_v12  ;;  %v607_v16 = vmul.f32 -0.5, %v591_v13  ;;  %v642_v17 = vmul.f32 1.442695, %v624_v11  ;;  %v638_v23 = vmul.f32 1.442695, %v622_v14 }
  0x94   :  { %v532_v18 = vpop.permute.xlu1 %531  ;;  %v527_v19 = vpop.permute.xlu0 %526 }
  0x95   :  { %v625_v20 = vmul.f32 %v609_v15, %v593_v12  ;;  %v623_v21 = vmul.f32 %v607_v16, %v591_v13  ;;  %v595_v22 = vsub.f32 %v532_v18, %v1672_v2  ;;  %v594_v24 = vsub.f32 %v527_v19, %v1672_v2 }
  0x96   :  { %1421 = vpow2.f32 %v642_v17 }
  0x97   :  { %v644_v25 = vmul.f32 1.442695, %v625_v20  ;;  %v640_v26 = vmul.f32 1.442695, %v623_v21  ;;  %v611_v27 = vmul.f32 -0.5, %v595_v22  ;;  %v610_v28 = vmul.f32 -0.5, %v594_v24 }
  0x98   :  { %v542_v29 = vpop.permute.xlu1 %541  ;;  %v537_v30 = vpop.permute.xlu0 %536 }
  0x99   :  { %1423 = vpow2.f32 %v644_v25  ;;  %v627_v31 = vmul.f32 %v611_v27, %v595_v22  ;;  %v597_v33 = vsub.f32 %v542_v29, %v1672_v2  ;;  %v596_v34 = vsub.f32 %v537_v30, %v1672_v2 }
  0x9a   :  { %1425 = vpow2.f32 %v640_v26  ;;  %v626_v35 = vmul.f32 %v610_v28, %v594_v24 }
  0x9b   :  { %1427 = vpow2.f32 %v638_v23  ;;  %v648_v36 = vmul.f32 1.442695, %v627_v31  ;;  %v613_v37 = vmul.f32 -0.5, %v597_v33  ;;  %v612_v38 = vmul.f32 -0.5, %v596_v34 }
  0x9c   :  { %v646_v39 = vmul.f32 1.442695, %v626_v35  ;;  %v552_v40 = vpop.permute.xlu1 %551  ;;  %v547_v41 = vpop.permute.xlu0 %546 }
  0x9d   :  { %1429 = vpow2.f32 %v648_v36  ;;  %v629_v42 = vmul.f32 %v613_v37, %v597_v33  ;;  %v628_v43 = vmul.f32 %v612_v38, %v596_v34  ;;  %v599_v44 = vsub.f32 %v552_v40, %v1672_v2 }
  0x9e   :  { %1431 = vpow2.f32 %v646_v39  ;;  %v598_v45 = vsub.f32 %v547_v41, %v1672_v2 }
  0x9f   :  { %v652_v46 = vmul.f32 1.442695, %v629_v42  ;;  %v650_v47 = vmul.f32 1.442695, %v628_v43  ;;  %v615_v48 = vmul.f32 -0.5, %v599_v44 }
  0xa0   :  { %v614_v49 = vmul.f32 -0.5, %v598_v45  ;;  %v562_v50 = vpop.permute.xlu1 %561  ;;  %v557_v51 = vpop.permute.xlu0 %556 }
  0xa1   :  { %1433 = vpow2.f32 %v652_v46  ;;  %v631_v53 = vmul.f32 %v615_v48, %v599_v44  ;;  %v601_v54 = vsub.f32 %v562_v50, %v1672_v2  ;;  %v600_v55 = vsub.f32 %v557_v51, %v1672_v2  ;;  %v1422_v56 = vpop.eup %1421 }
  0xa2   :  { %1435 = vpow2.f32 %v650_v47  ;;  %v630_v57 = vmul.f32 %v614_v49, %v598_v45 }
  0xa3   :  { %v1424_v58 = vpop.eup %1423  ;;  %v656_v59 = vmul.f32 1.442695, %v631_v53  ;;  %v617_v60 = vmul.f32 -0.5, %v601_v54  ;;  %v616_v61 = vmul.f32 -0.5, %v600_v55 }
  0xa4   :  { %v1426_v62 = vpop.eup %1425  ;;  %v654_v63 = vmul.f32 1.442695, %v630_v57  ;;  %v261_v3 = vpop.permute.xlu1 %260  ;;  %v671_v5 = vpack.c.bf16 %v1424_v58, %v1422_v56 }
  0xa5   :  { %v258_v4 = vpop.permute.xlu0 %257  ;;  %v1428_v0 = vpop.eup %1427  ;;  %1437 = vpow2.f32 %v656_v59  ;;  %v633_v6 = vmul.f32 %v617_v60, %v601_v54  ;;  %v632_v7 = vmul.f32 %v616_v61, %v600_v55  ;;  %vm305_vm2 = vcmp.eq.s32.totalorder %v261_v3, %v1685_v52 }
  0xa6   :  { %1439 = vpow2.f32 %v654_v63  ;;  %v1223_v8 = vsel %vm305_vm2, 1.0, %v1491_v32  ;;  %vm304_vm3 = vcmp.eq.s32.totalorder %v258_v4, %v1685_v52  ;;  %v670_v9 = vpack.c.bf16 %v1426_v62, %v1428_v0 }
  0xa7   :  { %v1430_v10 = vpop.eup %1429  ;;  %v660_v11 = vmul.f32 1.442695, %v633_v6  ;;  %v658_v12 = vmul.f32 1.442695, %v632_v7  ;;  %v1222_v13 = vsel %vm304_vm3, 1.0, %v1491_v32  ;;  %vm1492_vm3 = vmmov 0  }
  0xa8   :  { %v1432_v14 = vpop.eup %1431  ;;  %1347 = vmatprep.mubr.bf16.mxu1 %v670_v9  ;;  %v267_v15 = vpop.permute.xlu1 %266  ;;  %v352_v17 = vpack.c.bf16 %v1223_v8, %v1222_v13 }
  0xa9   :  { %v264_v16 = vpop.permute.xlu0 %263  ;;  %1441 = vpow2.f32 %v660_v11  ;;  %1348 = vmatmul.mubr.bf16.vlgmr.msra.gmra.mrb[0].mxu1 %v671_v5  ;;  %vm307_vm5 = vcmp.eq.s32.totalorder %v267_v15, %v1685_v52  ;;  %v672_v18 = vpack.c.bf16 %v1430_v10, %v1432_v14 }
  0xaa   :  { %vm306_vm6 = vcmp.eq.s32.totalorder %v264_v16, %v1685_v52  ;;  %1443 = vpow2.f32 %v658_v12  ;;  %v1225_v19 = vsel %vm307_vm5, 1.0, %v1491_v32  ;;  %1315 = vmatprep.mubr.msk.bf16.mxu0 %vm361_vm4, %v352_v17 }
  0xab   :  { %v1224_v20 = vsel %vm306_vm6, 1.0, %v1491_v32  ;;  %v1434_v21 = vpop.eup %1433  ;;  %1351 = vmatprep.mubr.bf16.mxu1 %v672_v18 }
  0xac   :  { %v353_v22 = vpack.c.bf16 %v1225_v19, %v1224_v20  ;;  %v1436_v23 = vpop.eup %1435  ;;  %v572_v24 = vpop.permute.xlu1 %571 }
  0xad   :  { %v567_v25 = vpop.permute.xlu0 %566  ;;  %v603_v26 = vsub.f32 %v572_v24, %v1672_v2  ;;  %v673_v28 = vpack.c.bf16 %v1434_v21, %v1436_v23 }
  0xae   :  { %v602_v27 = vsub.f32 %v567_v25, %v1672_v2  ;;  %1316 = vmatmul.mubr.msk.bf16.vlgmr.msra.gmra.mrb[0].mxu0 %vm361_vm4, %v353_v22 }
  0xaf   :  { %v1438_v29 = vpop.eup %1437  ;;  %v619_v30 = vmul.f32 -0.5, %v603_v26 }
  0xb0   :  { %v618_v31 = vmul.f32 -0.5, %v602_v27  ;;  %v1440_v33 = vpop.eup %1439  ;;  %v582_v34 = vpop.permute.xlu1 %581 }
  0xb1   :  { %v577_v35 = vpop.permute.xlu0 %576  ;;  %v635_v36 = vmul.f32 %v619_v30, %v603_v26  ;;  %1352 = vmatmul.mubr.bf16.gmra.mrb[4].mxu1 %v673_v28  ;;  %v605_v38 = vsub.f32 %v582_v34, %v1672_v2  ;;  %v674_v40 = vpack.c.bf16 %v1438_v29, %v1440_v33  ;;  %v1737_v29 = vld [vmem:[%s1823_s8] ss:$0 sm:$0xff] }
  0xb2   :  { %v634_v37 = vmul.f32 %v618_v31, %v602_v27  ;;  %v604_v39 = vsub.f32 %v577_v35, %v1672_v2 }
  0xb3   :  { %v1442_v41 = vpop.eup %1441  ;;  %v664_v42 = vmul.f32 1.442695, %v635_v36  ;;  %v621_v44 = vmul.f32 -0.5, %v605_v38  ;;  %1355 = vmatprep.mubr.bf16.mxu1 %v674_v40 }
  0xb4   :  { %v662_v43 = vmul.f32 1.442695, %v634_v37  ;;  %v620_v45 = vmul.f32 -0.5, %v604_v39  ;;  %v1444_v46 = vpop.eup %1443  ;;  %v273_v47 = vpop.permute.xlu1 %272 }
  0xb5   :  { %v270_v48 = vpop.permute.xlu0 %269  ;;  %1445 = vpow2.f32 %v664_v42  ;;  %v637_v49 = vmul.f32 %v621_v44, %v605_v38  ;;  %vm309_vm7 = vcmp.eq.s32.totalorder %v273_v47, %v1685_v52  ;;  %v675_v2 = vpack.c.bf16 %v1442_v41, %v1444_v46 }
  0xb6   :  { %v636_v50 = vmul.f32 %v620_v45, %v604_v39  ;;  %1447 = vpow2.f32 %v662_v43  ;;  %v1227_v51 = vsel %vm309_vm7, 1.0, %v1491_v32  ;;  %vm308_vm8 = vcmp.eq.s32.totalorder %v270_v48, %v1685_v52 }
  0xb7   :  { %v668_v53 = vmul.f32 1.442695, %v637_v49  ;;  %v1226_v55 = vsel %vm308_vm8, 1.0, %v1491_v32 }
  0xb8   :  { %v666_v54 = vmul.f32 1.442695, %v636_v50  ;;  %v354_v56 = vpack.c.bf16 %v1227_v51, %v1226_v55  ;;  %v279_v57 = vpop.permute.xlu1 %278 }
  0xb9   :  { %v276_v58 = vpop.permute.xlu0 %275  ;;  %1449 = vpow2.f32 %v668_v53  ;;  %1356 = vmatmul.mubr.bf16.gmra.mrb[8].mxu1 %v675_v2  ;;  %vm311_vm9 = vcmp.eq.s32.totalorder %v279_v57, %v1685_v52 }
  0xba   :  { %vm310_vm10 = vcmp.eq.s32.totalorder %v276_v58, %v1685_v52  ;;  %1451 = vpow2.f32 %v666_v54  ;;  %v1229_v59 = vsel %vm311_vm9, 1.0, %v1491_v32  ;;  %1319 = vmatprep.mubr.msk.bf16.mxu0 %vm361_vm4, %v354_v56 }
  0xbb   :  { %v1228_v60 = vsel %vm310_vm10, 1.0, %v1491_v32 }
  0xbc   :  { %v355_v61 = vpack.c.bf16 %v1229_v59, %v1228_v60  ;;  %v285_v62 = vpop.permute.xlu1 %284 }
  0xbd   :  { %v282_v63 = vpop.permute.xlu0 %281  ;;  %vm313_vm11 = vcmp.eq.s32.totalorder %v285_v62, %v1685_v52 }
  0xbe   :  { %vm312_vm12 = vcmp.eq.s32.totalorder %v282_v63, %v1685_v52  ;;  %1320 = vmatmul.mubr.msk.bf16.gmra.mrb[4].mxu0 %vm361_vm4, %v355_v61  ;;  %v1231_v3 = vsel %vm313_vm11, 1.0, %v1491_v32 }
  0xbf   :  { %v1230_v4 = vsel %vm312_vm12, 1.0, %v1491_v32  ;;  %v1446_v5 = vpop.eup %1445 }
  0xc0   :  { %v356_v0 = vpack.c.bf16 %v1231_v3, %v1230_v4  ;;  %v1448_v6 = vpop.eup %1447  ;;  %v291_v7 = vpop.permute.xlu1 %290 }
  0xc1   :  { %v288_v8 = vpop.permute.xlu0 %287  ;;  %vm315_vm13 = vcmp.eq.s32.totalorder %v291_v7, %v1685_v52  ;;  %v676_v9 = vpack.c.bf16 %v1446_v5, %v1448_v6 }
  0xc2   :  { %vm314_vm14 = vcmp.eq.s32.totalorder %v288_v8, %v1685_v52  ;;  %1323 = vmatprep.mubr.msk.bf16.mxu0 %vm361_vm4, %v356_v0  ;;  %v1233_v10 = vsel %vm315_vm13, 1.0, %v1491_v32 }
  0xc3   :  { %v1232_v11 = vsel %vm314_vm14, 1.0, %v1491_v32  ;;  %v1450_v12 = vpop.eup %1449  ;;  %1359 = vmatprep.mubr.bf16.mxu1 %v676_v9 }
  0xc4   :  { %v357_v13 = vpack.c.bf16 %v1233_v10, %v1232_v11  ;;  %v1452_v14 = vpop.eup %1451  ;;  %v297_v15 = vpop.permute.xlu1 %296 }
  0xc5   :  { %v294_v16 = vpop.permute.xlu0 %293  ;;  %vm317_vm15 = vcmp.eq.s32.totalorder %v297_v15, %v1685_v52  ;;  %v677_v17 = vpack.c.bf16 %v1450_v12, %v1452_v14 }
  0xc6   :  { %vm316_vm0 = vcmp.eq.s32.totalorder %v294_v16, %v1685_v52  ;;  %1324 = vmatmul.mubr.msk.bf16.gmra.mrb[8].mxu0 %vm361_vm4, %v357_v13  ;;  %v1235_v18 = vsel %vm317_vm15, 1.0, %v1491_v32 }
  0xc7   :  { %v1234_v19 = vsel %vm316_vm0, 1.0, %v1491_v32  ;;  %1360 = vmatmul.mubr.bf16.gmra.mrb[12].mxu1 %v677_v17 }
  0xc8   :  { %v358_v20 = vpack.c.bf16 %v1235_v18, %v1234_v19  ;;  %v303_v21 = vpop.permute.xlu1 %302 }
  0xc9   :  { %v300_v22 = vpop.permute.xlu0 %299  ;;  %vm319_vm1 = vcmp.eq.s32.totalorder %v303_v21, %v1685_v52 }
  0xca   :  { %vm318_vm2 = vcmp.eq.s32.totalorder %v300_v22, %v1685_v52  ;;  %1327 = vmatprep.mubr.msk.bf16.mxu0 %vm361_vm4, %v358_v20  ;;  %v1237_v23 = vsel %vm319_vm1, 1.0, %v1491_v32 }
  0xcb   :  { %v1236_v24 = vsel %vm318_vm2, 1.0, %v1491_v32 }
  0xcc   :  { %v359_v25 = vpack.c.bf16 %v1237_v23, %v1236_v24  ;;  %v886_v26 = vpop.permute.xlu1 %885 }
  0xcd   :  { %v881_v27 = vpop.permute.xlu0 %880 }
  0xce   :  { %1328 = vmatmul.mubr.msk.bf16.gmra.mrb[12].mxu0 %vm361_vm4, %v359_v25 }
  0xcf   :  { %1379 = vmatprep.mubr.msk.bf16.mxu0 %vm1492_vm3, %v1491_v32 }
  0xd0   :  { %v896_v31 = vpop.permute.xlu1 %895 }
  0xd1   :  { %v891_v35 = vpop.permute.xlu0 %890 }
  0xd4   :  { %v906_v48 = vpop.permute.xlu1 %905 }
  0xd5   :  { %v901_v2 = vpop.permute.xlu0 %900 }
  0xd8   :  { %v916_v59 = vpop.permute.xlu1 %915 }
  0xd9   :  { %v911_v60 = vpop.permute.xlu0 %910 }
  0xdc   :  { %v926_v6 = vpop.permute.xlu1 %925 }
  0xdd   :  { %v921_v10 = vpop.permute.xlu0 %920 }
  0xe0   :  { %v936_v21 = vpop.permute.xlu1 %935 }
  0xe1   :  { %v931_v24 = vpop.permute.xlu0 %930 }
 0x17c   :  { %v1349_v28 = vpop.f32.mrb[0].mxu1 }
 0x17d   :  { %v783_v52 = vpop.f32.mrb[1].mxu1  ;;  %v792_v33 = vadd.f32 %v1349_v28, %v1737_v29 }
 0x17e   :  { %v1350_v30 = vpop.f32.mrb[2].mxu1  ;;  %v784_v36 = vadd.f32 %v1737_v29, %v783_v52 }
 0x17f   :  { %v786_v34 = vpop.f32.mrb[3].mxu1  ;;  %v795_v38 = vadd.f32 %v1350_v30, %v1737_v29 }
 0x180   :  { %v787_v41 = vadd.f32 %v1737_v29, %v786_v34 }
 0x181   :  { %v1317_v37 = vpop.f32.mrb[0].mxu0 }
 0x182   :  { %v848_v39 = vmul.f32 %v1317_v37, %v792_v33  ;;  %v424_v40 = vpop.f32.mrb[1].mxu0 }
 0x183   :  { %v846_v42 = vmul.f32 %v784_v36, %v424_v40  ;;  %v1318_v43 = vpop.f32.mrb[2].mxu0 }
 0x184   :  { %v849_v44 = vmul.f32 %v1318_v43, %v795_v38  ;;  %v427_v45 = vpop.f32.mrb[3].mxu0  ;;  %v1353_v46 = vpop.f32.mrb[4].mxu1  ;;  %v960_v49 = vmul.f32 %v891_v35, %v848_v39 }
 0x185   :  { %v847_v47 = vmul.f32 %v787_v41, %v427_v45  ;;  %v799_v51 = vpop.f32.mrb[5].mxu1  ;;  %v958_v53 = vmul.f32 %v881_v27, %v846_v42  ;;  %v808_v3 = vadd.f32 %v1353_v46, %v1737_v29  ;;  %v941_v45 = vpop.permute.xlu0 %940 }
 0x186   :  { %v961_v50 = vmul.f32 %v896_v31, %v849_v44  ;;  %v1354_v55 = vpop.f32.mrb[6].mxu1  ;;  %v800_v5 = vadd.f32 %v1737_v29, %v799_v51  ;;  %v946_v44 = vpop.permute.xlu1 %945 }
 0x187   :  { %v959_v54 = vmul.f32 %v886_v26, %v847_v47  ;;  %v802_v57 = vpop.f32.mrb[7].mxu1  ;;  %v811_v7 = vadd.f32 %v1354_v55, %v1737_v29 }
 0x188   :  { %v989_v56 = vpack.c.bf16 %v961_v50, %v960_v49  ;;  %v803_v11 = vadd.f32 %v1737_v29, %v802_v57 }
 0x189   :  { %v988_v58 = vpack.c.bf16 %v959_v54, %v958_v53 }
 0x18b   :  { %1364 = vmatpush3.bf16.msra.mxu0 %v988_v58 }
 0x18c   :  { %1365 = vmatprep.subr.bf16.mxu0 %v1491_v32  ;;  %v1357_v61 = vpop.f32.mrb[8].mxu1 }
 0x18d   :  { %v815_v62 = vpop.f32.mrb[9].mxu1  ;;  %v824_v22 = vadd.f32 %v1357_v61, %v1737_v29  ;;  %v956_v61 = vpop.permute.xlu1 %955 }
 0x18e   :  { %v1358_v63 = vpop.f32.mrb[10].mxu1  ;;  %v816_v25 = vadd.f32 %v1737_v29, %v815_v62  ;;  %v951_v62 = vpop.permute.xlu0 %950 }
 0x18f   :  { %1366 = vmatpush3.bf16.msra.mxu0 %v989_v56  ;;  %v818_v4 = vpop.f32.mrb[11].mxu1  ;;  %v827_v28 = vadd.f32 %v1358_v63, %v1737_v29 }
 0x190   :  { %1367 = vmatprep.subr.bf16.mxu0 %v1491_v32  ;;  %v819_v31 = vadd.f32 %v1737_v29, %v818_v4 }
 0x191   :  { %v1321_v0 = vpop.f32.mrb[4].mxu0 }
 0x192   :  { %v852_v8 = vmul.f32 %v1321_v0, %v808_v3  ;;  %v440_v9 = vpop.f32.mrb[5].mxu0 }
 0x193   :  { %v850_v12 = vmul.f32 %v800_v5, %v440_v9  ;;  %v1322_v13 = vpop.f32.mrb[6].mxu0  ;;  %v1493_v9 = vmov 1.0|1.0  }
 0x194   :  { %v853_v14 = vmul.f32 %v1322_v13, %v811_v7  ;;  %v443_v15 = vpop.f32.mrb[7].mxu0  ;;  %v964_v17 = vmul.f32 %v911_v60, %v852_v8  ;;  %v1256_v7 = vld [vmem:[%s177_s30] ss:$0 sm:$0xff]  ;;  %v978_v8 = vpop.permute.xlu0 %977 }
 0x195   :  { %v851_v16 = vmul.f32 %v803_v11, %v443_v15  ;;  %v962_v19 = vmul.f32 %v901_v2, %v850_v12  ;;  %vm983_vm4 = vcmp.eq.s32.totalorder %v978_v8, %v1256_v7 }
 0x196   :  { %v965_v18 = vmul.f32 %v916_v59, %v853_v14  ;;  %vm1258_vm5 = vmpackc.low %vm983_vm4, %vm983_vm4 }
 0x197   :  { %v963_v20 = vmul.f32 %v906_v48, %v851_v16 }
 0x198   :  { %v991_v23 = vpack.c.bf16 %v965_v18, %v964_v17 }
 0x199   :  { %v990_v26 = vpack.c.bf16 %v963_v20, %v962_v19  ;;  %v1325_v27 = vpop.f32.mrb[8].mxu0 }
 0x19a   :  { %v856_v52 = vmul.f32 %v1325_v27, %v824_v22  ;;  %v456_v30 = vpop.f32.mrb[9].mxu0  ;;  %v1361_v34 = vpop.f32.mrb[12].mxu1 }
 0x19b   :  { %v854_v33 = vmul.f32 %v816_v25, %v456_v30  ;;  %v1326_v35 = vpop.f32.mrb[10].mxu0  ;;  %1368 = vmatpush3.bf16.msra.mxu0 %v990_v26  ;;  %v831_v37 = vpop.f32.mrb[13].mxu1  ;;  %v840_v48 = vadd.f32 %v1361_v34, %v1737_v29 }
 0x19c   :  { %v857_v36 = vmul.f32 %v1326_v35, %v827_v28  ;;  %v459_v38 = vpop.f32.mrb[11].mxu0  ;;  %1369 = vmatprep.subr.bf16.mxu0 %v1491_v32  ;;  %v1362_v40 = vpop.f32.mrb[14].mxu1  ;;  %v968_v41 = vmul.f32 %v931_v24, %v856_v52  ;;  %v832_v50 = vadd.f32 %v1737_v29, %v831_v37 }
 0x19d   :  { %v855_v39 = vmul.f32 %v819_v31, %v459_v38  ;;  %v834_v43 = vpop.f32.mrb[15].mxu1  ;;  %v966_v46 = vmul.f32 %v921_v10, %v854_v33  ;;  %v843_v53 = vadd.f32 %v1362_v40, %v1737_v29  ;;  %v987_v10 = vld [vmem:[#allocation3] sm:$0xff] }
 0x19e   :  { %v969_v42 = vmul.f32 %v936_v21, %v857_v36  ;;  %v835_v56 = vadd.f32 %v1737_v29, %v834_v43 }
 0x19f   :  { %v967_v47 = vmul.f32 %v926_v6, %v855_v39  ;;  %1370 = vmatpush3.bf16.msra.mxu0 %v991_v23 }
 0x1a0   :  { %v993_v49 = vpack.c.bf16 %v969_v42, %v968_v41  ;;  %1371 = vmatprep.subr.bf16.mxu0 %v1491_v32 }
 0x1a1   :  { %v992_v51 = vpack.c.bf16 %v967_v47, %v966_v46  ;;  %v1329_v2 = vpop.f32.mrb[12].mxu0 }
 0x1a2   :  { %v860_v54 = vmul.f32 %v1329_v2, %v840_v48  ;;  %v472_v55 = vpop.f32.mrb[13].mxu0 }
 0x1a3   :  { %v858_v57 = vmul.f32 %v832_v50, %v472_v55  ;;  %v1330_v58 = vpop.f32.mrb[14].mxu0  ;;  %1372 = vmatpush3.bf16.msra.mxu0 %v992_v51 }
 0x1a4   :  { %v861_v59 = vmul.f32 %v1330_v58, %v843_v53  ;;  %v475_v60 = vpop.f32.mrb[15].mxu0  ;;  %1373 = vmatprep.subr.bf16.mxu0 %v1491_v32  ;;  %v972_v3 = vmul.f32 %v951_v62, %v860_v54 }
 0x1a5   :  { %v859_v63 = vmul.f32 %v835_v56, %v475_v60  ;;  %v970_v5 = vmul.f32 %v941_v45, %v858_v57 }
 0x1a6   :  { %v973_v4 = vmul.f32 %v956_v61, %v861_v59 }
 0x1a7   :  { %v971_v0 = vmul.f32 %v946_v44, %v859_v63  ;;  %1374 = vmatpush3.bf16.msra.mxu0 %v993_v49 }
 0x1a8   :  { %v995_v6 = vpack.c.bf16 %v973_v4, %v972_v3  ;;  %1375 = vmatprep.subr.bf16.mxu0 %v1491_v32 }
 0x1a9   :  { %v994_v29 = vpack.c.bf16 %v971_v0, %v970_v5 }
 0x1ab   :  { %1376 = vmatpush3.bf16.msra.mxu0 %v994_v29 }
 0x1ac   :  { %1377 = vmatprep.subr.bf16.mxu0 %v1491_v32 }
 0x1af   :  { %1378 = vmatpush3.bf16.msra.mxu0 %v995_v6 }
 0x1b2   :  { %1380 = vmatmul.mubr.msk.bf16.vlgmr.msra.gmra.mrb[16].mxu0 %vm1258_vm5, %v1493_v9 }
 0x285   :  { %v1030_v11 = vpop.f32.mrb[16].mxu0 }
 0x286   :  { %v1036_v12 = vadd.f32 %v1030_v11, %v987_v10  ;;  %v1381_v13 = vpop.f32.mrb[17].mxu0 }
 0x287   :  { %v1033_v14 = vpop.f32.mrb[18].mxu0 }
 0x288   :  { %1037 = vst [vmem:[#allocation3] sm:$0xff] %v1036_v12  ;;  %v1382_v15 = vpop.f32.mrb[19].mxu0 }
 0x289 PF:  { %1383 = vmatprep.subr.bf16.mxu0 %v1489_v1  ;;  %v1453_v16 = vld [vmem:[%s1825_s10] sm:$0xff]   ;;  %vm1494_vm6 = vmmov 0   ;;  %v1454_v32 = vld [vmem:[%s1825_s10 + $0x8] sm:$0xff]   ;;  %v1455_v17 = vld [vmem:[%s1825_s10 + $0x10] sm:$0xff]  }
 0x28a   :  { %1399 = vmatprep.mubr.msk.bf16.mxu0 %vm1494_vm6, %v1489_v1  ;;  %1384 = vmatpush3.bf16.msra.mxu0 %v1453_v16  ;;  %v1456_v18 = vld [vmem:[%s1825_s10 + $0x18] sm:$0xff]   ;;  %v1457_v19 = vld [vmem:[%s1825_s10 + $0x20] sm:$0xff]   ;;  %v1458_v20 = vld [vmem:[%s1825_s10 + $0x28] sm:$0xff]  }
 0x28b   :  { %1385 = vmatprep.subr.bf16.mxu0 %v1489_v1  ;;  %v1459_v21 = vld [vmem:[%s1825_s10 + $0x30] sm:$0xff]   ;;  %v1460_v22 = vld [vmem:[%s1825_s10 + $0x38] sm:$0xff]   ;;  %v1260_v25 = vld [vmem:[%s1826_s11] ss:$0 sm:$0xff]  ;;  %s1495_s10 = smov [#allocation7]  }
 0x28c   :  { %s1177_s11 = sshll.u32 %s1495_s10, 4  ;;  %s1178_s11 = int_to_ptr.vmem [resolvable:$true] %s1177_s11 }
 0x28d   :  { %s1465_s2 = scalar_lea.vmem %s1178_s11, 128  ;;  %p1470_p5 = scmp.lt.s32.totalorder %s1178_s11, %s1178_s11 }
 0x28e   :  { %1386 = vmatpush3.bf16.msra.mxu0 %v1454_v32  ;;  %p1466_p4 = scmp.ne.s32.totalorder %s1178_s11, %s1465_s2  ;;  %p1471_p6 = scmp.lt.s32.totalorder %s1465_s2, %s1465_s2 }
 0x28f   :  { %1387 = vmatprep.subr.bf16.mxu0 %v1489_v1  ;;  %v1041_v23 = vld [vmem:[#allocation3] sm:$0xff] }
 0x290   :  { %v1042_v24 = vpack.c.bf16 %v1041_v23, %v1041_v23  ;;  %p1472_p7 = por %p1471_p6, %p1470_p5 }
 0x292   :  { %1388 = vmatpush3.bf16.msra.mxu0 %v1455_v17  ;;  %p1473_p8 = pnand %p1472_p7, %p1466_p4 }
 0x293   :  { %1389 = vmatprep.subr.bf16.mxu0 %v1489_v1 }
 0x296   :  { %1390 = vmatpush3.bf16.msra.mxu0 %v1456_v18 }
 0x297   :  { %1391 = vmatprep.subr.bf16.mxu0 %v1489_v1 }
 0x29a   :  { %1392 = vmatpush3.bf16.msra.mxu0 %v1457_v19 }
 0x29b   :  { %1393 = vmatprep.subr.bf16.mxu0 %v1489_v1 }
 0x29e   :  { %1394 = vmatpush3.bf16.msra.mxu0 %v1458_v20 }
 0x29f   :  { %1395 = vmatprep.subr.bf16.mxu0 %v1489_v1 }
 0x2a2   :  { %1396 = vmatpush3.bf16.msra.mxu0 %v1459_v21 }
 0x2a3   :  { %1397 = vmatprep.subr.bf16.mxu0 %v1489_v1 }
 0x2a6   :  { %1398 = vmatpush3.bf16.msra.mxu0 %v1460_v22 }
 0x2a9   :  { %1400 = vmatmul.mubr.bf16.vlgmr.msra.gmra.mrb[0].mxu0 %v1042_v24 }
 0x37c   :  { %v1148_v26 = vpop.f32.mrb[0].mxu0 }
 0x37d   :  { %v1149_v27 = vadd.f32 %v1260_v25, %v1148_v26  ;;  %v1401_v28 = vpop.f32.mrb[1].mxu0 }
 0x37e   :  { %v1151_v52 = vpop.f32.mrb[2].mxu0 }
 0x37f   :  { %v1155_v30 = vand.u32 2147483647, %v1149_v27  ;;  %v1402_v31 = vpop.f32.mrb[3].mxu0  ;;  %v1154_v42 = vmax.f32 %v1149_v27, 0.0 }
 0x381   :  { %v1156_v33 = vsub.f32 0.0, %v1155_v30 }
 0x383   :  { %v1157_v34 = vmul.f32 1.442695, %v1156_v33 }
 0x385   :  { %1461 = vpow2.f32 %v1157_v34 }
 0x38f   :  { %v1462_v35 = vpop.eup %1461 }
 0x390   :  { %v1159_v36 = vadd.f32 1.0, %v1462_v35  ;;  %v1162_v1 = vmul.f32 -0.5, %v1462_v35  ;;  %v1165_v38 = vand.u32 2147483647, %v1462_v35 }
 0x392   :  { %1463 = vlog2.f32 %v1159_v36  ;;  %v1163_v37 = vadd.f32 1.0, %v1162_v1  ;;  %vm1166_vm7 = vcmp.lt.f32.partialorder %v1165_v38, 0.0004427343 }
 0x394   :  { %v1164_v41 = vmul.f32 %v1462_v35, %v1163_v37 }
 0x39c   :  { %v1464_v39 = vpop.eup %1463 }
 0x39d   :  { %v1161_v40 = vmul.f32 0.6931472, %v1464_v39 }
 0x39f   :  { %v1167_v43 = vsel %vm1166_vm7, %v1164_v41, %v1161_v40 }
 0x3a0   :  { %v1168_v44 = vadd.f32 %v1167_v43, %v1154_v42 }
 0x3a2   :  { %v1269_v45 = vadd.f32 -0.6931472, %v1168_v44 }
 0x3a4   :  { %1170 = vst [vmem:[#allocation7] sm:$0xff] %v1269_v45 }
 0x3a5   :  { %1476 = shalt.err (!%p1473_p8)
}
 0x3a6   :  { %s1477_s20 = scalar_lea.hbm %s1827_s12, 128 }
 0x3a7   :  { %p1478_p9 = scmp.ne.s32.totalorder %s1827_s12, %s1477_s20  ;;  %p1481_p10 = scmp.lt.u32.totalorder %s1477_s20, %s1827_s12 }
 0x3a9   :  { %p1483_p11 = pnand %p1481_p10, %p1478_p9 }
 0x3ab   :  { %1486 = shalt.err (!%p1483_p11)
}
 0x3ac   :  { %1180 = dma.vmem_to_hbm [thread:$0]  %s1178_s11, 128, %s1827_s12, [#allocation8]  }
 0x3ad   :  { %1487 = dma.done.wait [#allocation8], 128  }
 0x3ae   :  { %1488 = vsyncadd [#allocation8], 4294967168 }
 0x3af   :  { %1184 = vsyncpa [#allocation8], 1 }

</bundles_post_ra>
